<compile_context>
chip_gen: v6e
topology: v6e:2x2x1
jax: 0.10.0
libtpu: 0.0.40
codegen_flags: <defaults>
</compile_context>

<pallas_src>
import functools

import jax
import jax.numpy as jnp
from jax.experimental import pallas as pl
from jax.experimental.pallas import tpu as pltpu


def _per_sample_stats(x, eps, n):
    """x: (B, R, L) f32. Returns (mean, inv) with shape (B, 1, 1) each."""
    s_x = jnp.sum(x, axis=(1, 2), keepdims=True)
    s_xx = jnp.sum(x * x, axis=(1, 2), keepdims=True)
    mean = s_x * (1.0 / n)
    # torch .std() default is unbiased (divide by n-1); clamp tiny negative
    # values that the one-pass formulation can produce.
    var = jnp.maximum((s_xx - s_x * mean) * (1.0 / (n - 1)), 0.0)
    std = jnp.sqrt(var)
    inv = pl.reciprocal(std + eps, approx=False)  # exact: scalar-per-sample cost
    return mean, inv


def _ln_affine_kernel(x_ref, g_ref, b_ref, o_ref, *, eps, n):
    x = x_ref[...].astype(jnp.float32)            # (B, R, L)
    mean, inv = _per_sample_stats(x, eps, n)      # (B, 1, 1)
    gamma = g_ref[...].astype(jnp.float32)        # (R, 1)
    beta = b_ref[...].astype(jnp.float32)         # (R, 1)
    scale = gamma[None, :, :] * inv               # (B, R, 1)
    shift = beta[None, :, :] - mean * scale       # (B, R, 1)
    o_ref[...] = (x * scale + shift).astype(o_ref.dtype)


def _ln_plain_kernel(x_ref, o_ref, *, eps, n):
    x = x_ref[...].astype(jnp.float32)
    mean, inv = _per_sample_stats(x, eps, n)
    o_ref[...] = ((x - mean) * inv).astype(o_ref.dtype)


def _choose_fold(C, HW):
    """Smallest k dividing HW with (C*k) % 8 == 0 and (HW//k) % 128 == 0."""
    for k in range(1, HW + 1):
        if HW % k:
            continue
        if (C * k) % 8:
            continue
        if (HW // k) % 128:
            continue
        return k
    return 1  # fall back to natural (C, HW) layout (accepts padded tiles)


def _choose_batch_block(N, sample_bytes, target_bytes=2 << 20):
    """Largest divisor of N keeping the block under target_bytes and, when
    N >= 2, keeping at least 2 grid steps (v7x megacore sharding)."""
    if N <= 1:
        return 1
    best = 1
    for b in range(1, N // 2 + 1):
        if N % b:
            continue
        if b * sample_bytes > target_bytes:
            continue
        best = max(best, b)
    return best


def layer_norm(x, gamma=None, beta=None, eps=1e-5, affine=True):
    """x: (N, C, H, W). gamma, beta: (C,). Matches the torch module forward."""
    N, C, H, W = x.shape
    HW = H * W

    # lane/sublane-dense per-sample layout: (C, HW) -> (R, L) = (C*k, HW//k)
    k = _choose_fold(C, HW)
    R, L = C * k, HW // k
    x3 = x.reshape(N, R, L)

    dsize = jnp.dtype(x.dtype).itemsize
    sample_bytes = R * L * dsize
    B_blk = _choose_batch_block(N, sample_bytes)
    grid = (N // B_blk,)
    n_elems = R * L

    # VMEM budget: double-buffered in + out blocks, f32 working copy, params.
    block_bytes = B_blk * sample_bytes
    vmem_needed = 4 * block_bytes + 4 * B_blk * R * L * 4 + (2 << 20)
    vmem_limit = int(min(64 << 20, max(vmem_needed, 32 << 20)))
    # TODO(synk): samples with C*HW too large for whole-sample blocks (v7x
    # 64 MiB VMEM) should switch to a two-pass tiled-HW sum/sumsq + apply scheme.

    cost = pl.CostEstimate(
        flops=6 * N * n_elems,
        transcendentals=2 * N,
        bytes_accessed=2 * N * n_elems * dsize,
    )
    cparams = pltpu.CompilerParams(
        dimension_semantics=("parallel",),
        vmem_limit_bytes=vmem_limit,
    )

    x_spec = pl.BlockSpec((B_blk, R, L), lambda i: (i, 0, 0))
    out_shape = jax.ShapeDtypeStruct((N, R, L), x.dtype)

    if affine:
        # fold per-channel params into the (C*k,) sublane layout
        gamma_f = jnp.repeat(gamma.astype(jnp.float32), k).reshape(R, 1)
        beta_f = jnp.repeat(beta.astype(jnp.float32), k).reshape(R, 1)
        kernel = functools.partial(_ln_affine_kernel, eps=eps, n=n_elems)
        out = pl.pallas_call(
            kernel,
            out_shape=out_shape,
            grid_spec=pltpu.PrefetchScalarGridSpec(
                num_scalar_prefetch=0,
                grid=grid,
                in_specs=[
                    x_spec,
                    pl.BlockSpec((R, 1), lambda i: (0, 0)),
                    pl.BlockSpec((R, 1), lambda i: (0, 0)),
                ],
                out_specs=x_spec,
            ),
            compiler_params=cparams,
            cost_estimate=cost,
        )(x3, gamma_f, beta_f)
    else:
        kernel = functools.partial(_ln_plain_kernel, eps=eps, n=n_elems)
        out = pl.pallas_call(
            kernel,
            out_shape=out_shape,
            grid_spec=pltpu.PrefetchScalarGridSpec(
                num_scalar_prefetch=0,
                grid=grid,
                in_specs=[x_spec],
                out_specs=x_spec,
            ),
            compiler_params=cparams,
            cost_estimate=cost,
        )(x3)

    return out.reshape(N, C, H, W)


def layer_norm_ref(x, gamma=None, beta=None, eps=1e-5, affine=True):
    # pure-JAX reference mirroring the PyTorch forward
    N = x.shape[0]
    flat = x.reshape(N, -1)
    mean = flat.mean(axis=1).reshape(N, 1, 1, 1)
    std = flat.std(axis=1, ddof=1).reshape(N, 1, 1, 1)  # unbiased like torch
    y = (x - mean) / (std + eps)
    if affine:
        y = y * gamma.reshape(1, -1, 1, 1) + beta.reshape(1, -1, 1, 1)
    return y


if __name__ == "__main__":
    key = jax.random.PRNGKey(0)
    kx, kg = jax.random.split(key)

    N, C, H, W = 2, 4, 16, 16
    x = jax.random.normal(kx, (N, C, H, W), dtype=jnp.float32)

    # deterministic parameter init matching the module's __init__:
    #   gamma ~ Uniform[0, 1), beta = zeros
    gamma = jax.random.uniform(kg, (C,), dtype=jnp.float32)
    beta = jnp.zeros((C,), dtype=jnp.float32)

    out = layer_norm(x, gamma, beta, eps=1e-5, affine=True)
    out = jax.block_until_ready(out)
    ref = layer_norm_ref(x, gamma, beta, eps=1e-5, affine=True)
    assert out.shape == (N, C, H, W)
    assert jnp.allclose(out, ref, atol=1e-5, rtol=1e-5), "affine mismatch vs reference"

    out_na = layer_norm(x, eps=1e-5, affine=False)
    out_na = jax.block_until_ready(out_na)
    ref_na = layer_norm_ref(x, eps=1e-5, affine=False)
    assert jnp.allclose(out_na, ref_na, atol=1e-5, rtol=1e-5), "no-affine mismatch vs reference"

    print("KERNEL_OK")
</pallas_src>

<mosaic_0001>
module attributes {stable_mosaic.version = 11 : i64} {
  func.func @_ln_affine_kernel(%arg0: i32, %arg1: memref<1x8x128xf32, #tpu.memory_space<vmem>>, %arg2: memref<8x1xf32, #tpu.memory_space<vmem>>, %arg3: memref<8x1xf32, #tpu.memory_space<vmem>>, %arg4: memref<1x8x128xf32, #tpu.memory_space<vmem>>) attributes {dimension_semantics = [#tpu.dimension_semantics<parallel>], iteration_bounds = array<i64: 2>, scalar_prefetch = 0 : i64, scratch_operands = 0 : i64, tpu.core_type = #tpu.core_type<tc>, window_params = [{transform_indices = @transform_0, window_bounds = array<i64: 1, 8, 128>}, {pipeline_mode = #tpu.pipeline_mode<synchronous>, transform_indices = @transform_1, window_bounds = array<i64: 8, 1>}, {pipeline_mode = #tpu.pipeline_mode<synchronous>, transform_indices = @transform_2, window_bounds = array<i64: 8, 1>}, {transform_indices = @transform_3, window_bounds = array<i64: 1, 8, 128>}]} {
    %c0 = arith.constant 0 : index
    %c0_0 = arith.constant 0 : index
    %c0_1 = arith.constant 0 : index
    %0 = vector.load %arg1[%c0, %c0_0, %c0_1] : memref<1x8x128xf32, #tpu.memory_space<vmem>>, vector<1x8x128xf32>
    %cst = arith.constant dense<0.000000e+00> : vector<1xf32>
    %1 = vector.multi_reduction <add>, %0, %cst [1, 2] : vector<1x8x128xf32> to vector<1xf32>
    %2 = vector.shape_cast %1 : vector<1xf32> to vector<1x1x1xf32>
    %3 = arith.mulf %0, %0 : vector<1x8x128xf32>
    %cst_2 = arith.constant dense<0.000000e+00> : vector<1xf32>
    %4 = vector.multi_reduction <add>, %3, %cst_2 [1, 2] : vector<1x8x128xf32> to vector<1xf32>
    %5 = vector.shape_cast %4 : vector<1xf32> to vector<1x1x1xf32>
    %cst_3 = arith.constant 9.765625E-4 : f32
    %6 = vector.broadcast %cst_3 : f32 to vector<1x1x1xf32>
    %7 = arith.mulf %2, %6 : vector<1x1x1xf32>
    %8 = arith.mulf %2, %7 : vector<1x1x1xf32>
    %9 = arith.subf %5, %8 : vector<1x1x1xf32>
    %cst_4 = arith.constant 9.77517105E-4 : f32
    %10 = vector.broadcast %cst_4 : f32 to vector<1x1x1xf32>
    %11 = arith.mulf %9, %10 : vector<1x1x1xf32>
    %cst_5 = arith.constant 0.000000e+00 : f32
    %12 = vector.broadcast %cst_5 : f32 to vector<1x1x1xf32>
    %13 = arith.maximumf %11, %12 : vector<1x1x1xf32>
    %14 = math.sqrt %13 : vector<1x1x1xf32>
    %cst_6 = arith.constant 9.99999974E-6 : f32
    %15 = vector.broadcast %cst_6 : f32 to vector<1x1x1xf32>
    %16 = arith.addf %14, %15 : vector<1x1x1xf32>
    %17 = tpu.reciprocal %16 : vector<1x1x1xf32> -> vector<1x1x1xf32>
    %c0_7 = arith.constant 0 : index
    %c0_8 = arith.constant 0 : index
    %18 = vector.load %arg2[%c0_7, %c0_8] : memref<8x1xf32, #tpu.memory_space<vmem>>, vector<8x1xf32>
    %c0_9 = arith.constant 0 : index
    %c0_10 = arith.constant 0 : index
    %19 = vector.load %arg3[%c0_9, %c0_10] : memref<8x1xf32, #tpu.memory_space<vmem>>, vector<8x1xf32>
    %20 = vector.shape_cast %18 : vector<8x1xf32> to vector<1x8x1xf32>
    %21 = vector.broadcast %17 : vector<1x1x1xf32> to vector<1x8x1xf32>
    %22 = arith.mulf %20, %21 : vector<1x8x1xf32>
    %23 = vector.shape_cast %19 : vector<8x1xf32> to vector<1x8x1xf32>
    %24 = vector.broadcast %7 : vector<1x1x1xf32> to vector<1x8x1xf32>
    %25 = arith.mulf %24, %22 : vector<1x8x1xf32>
    %26 = arith.subf %23, %25 : vector<1x8x1xf32>
    %27 = vector.broadcast %22 : vector<1x8x1xf32> to vector<1x8x128xf32>
    %28 = arith.mulf %0, %27 : vector<1x8x128xf32>
    %29 = vector.broadcast %26 : vector<1x8x1xf32> to vector<1x8x128xf32>
    %30 = arith.addf %28, %29 : vector<1x8x128xf32>
    %c0_11 = arith.constant 0 : index
    %c0_12 = arith.constant 0 : index
    %c0_13 = arith.constant 0 : index
    %31 = vector.load %arg4[%c0_11, %c0_12, %c0_13] : memref<1x8x128xf32, #tpu.memory_space<vmem>>, vector<1x8x128xf32>
    tpu.vector_store %arg4[%c0_11, %c0_12, %c0_13], %30 {strides = array<i32>} : memref<1x8x128xf32, #tpu.memory_space<vmem>>, vector<1x8x128xf32>,
    return
  }
  func.func @transform_0(%arg0: i32) -> (i32, i32, i32) {
    %c0_i32 = arith.constant 0 : i32
    %c0_i32_0 = arith.constant 0 : i32
    %c0_i32_1 = arith.constant 0 : i32
    return %arg0, %c0_i32, %c0_i32_0 : i32, i32, i32
  }
  func.func @transform_1(%arg0: i32) -> (i32, i32) {
    %c0_i32 = arith.constant 0 : i32
    %c0_i32_0 = arith.constant 0 : i32
    %c0_i32_1 = arith.constant 0 : i32
    return %c0_i32, %c0_i32_0 : i32, i32
  }
  func.func @transform_2(%arg0: i32) -> (i32, i32) {
    %c0_i32 = arith.constant 0 : i32
    %c0_i32_0 = arith.constant 0 : i32
    %c0_i32_1 = arith.constant 0 : i32
    return %c0_i32, %c0_i32_0 : i32, i32
  }
  func.func @transform_3(%arg0: i32) -> (i32, i32, i32) {
    %c0_i32 = arith.constant 0 : i32
    %c0_i32_0 = arith.constant 0 : i32
    %c0_i32_1 = arith.constant 0 : i32
    return %arg0, %c0_i32, %c0_i32_0 : i32, i32, i32
  }
}

</mosaic_0001>

<bundles_post_ra>
// kernel: tpu_custom_call.1
= control target key start
LH: loop header
LB: loop body
LE: loop exit
PB: predicated region body
PF: predicated region fallthrough
CT: control target
= control target key end

     0   :  { %8 = vsyncpa [#allocation3], 0  ;;  %s522_s0 = inlined_call_operand.vmem [shape: f32[2,8,128], index: 0, kind: input, shape index: {}]   ;;  %s523_s1 = inlined_call_operand.vmem [shape: f32[8,1], index: 1, kind: input, shape index: {}]   ;;  %s524_s2 = inlined_call_operand.vmem [shape: f32[8,1], index: 2, kind: input, shape index: {}]   ;;  %s525_s3 = inlined_call_operand.hbm [shape: f32[2,8,128], index: 3, kind: output, shape index: {}]  }
   0x1   :  { %10 = vsyncpa [#allocation3 + $0x1], 0  ;;  %s429_s12 = smov 0   ;;  %s431_s13 = smov 0  }
   0x2   :  { %s433_s14 = smov 0   ;;  %s435_s15 = smov 0  }
   0x3 LB: > { %s450_s16 = sadd.s32 4294967295, %s405_s15   ;;  %s289_s17 = sadd.s32 4294967294, %s405_s15   ;;  %s405_s15 = sphi %s435_s15, %s531_s15   ;;  %s401_s14 = sphi %s433_s14, %s530_s14   ;;  %s397_s13 = sphi %s431_s13, %s529_s13   ;;  %s393_s12 = sphi %s429_s12, %s528_s12  }
   0x4   : > { %s454_s18 = sadd.s32 1, %s405_s15   ;;  %s91_s19 = sadd.s32 1, %s401_s14 }
   0x5   : > { %s88_s20 = ssub.s32 %s405_s15, %s454_s18  ;;  %p101_p0 = scmp.ne.s32.totalorder %s401_s14, %s397_s13 }
   0x6   : > { %p89_p1 = scmp.eq.s32.totalorder %s88_s20, 0  ;;  %p102_p2 = scmp.eq.s32.totalorder %s450_s16, 1 }
   0x7   : > { %p107_p3 = scmp.ne.s32.totalorder %s397_s13, %s393_s12  ;;  %p108_p4 = scmp.eq.s32.totalorder %s289_s17, 1 }
   0x8   : > { %s465_s21 = scalar_select %p89_p1, %s401_s14, %s91_s19  }
   0x9   : > { %p467_p5 = por %p102_p2, %p101_p0  ;;  %p471_p6 = por %p108_p4, %p107_p3 }
   0xa   : > { %p292_p7 = scmp.ge.s32.totalorder %s405_s15, 1  ;;  %p139_p8 = scmp.lt.s32.totalorder %s405_s15, 3 }
   0xc   : > { %p140_p9 = pnand %p292_p7, %p139_p8 }
   0xd   : > { %p162_p10 = scmp.lt.s32.totalorder (!%p140_p9), %s450_s16, 1  ;;  %s159_s6 = sand.u32 (!%p140_p9), 1, %s397_s13  }
   0xe   : > { %143 = sbr.rel (%p140_p9) target bundleno = 363 (0x16b), region = 32  ;;  %s293_s7 = sshll.u32 (!%p140_p9), %s159_s6, 3 }
   0xf   : > { %s296_s8 = sshll.u32 (!%p140_p9), %s450_s16, 7  ;;  %s161_s9 = scalar_lea.vmem (!%p140_p9), [#allocation2], %s293_s7 }
  0x10   : > { %s230_s10 = sshll.u32 (!%p140_p9), %s161_s9, 4  ;;  %s228_s19 = scalar_lea.hbm (!%p140_p9), %s525_s3, %s296_s8  ;;  %s231_s10 = int_to_ptr.vmem [resolvable:$true] %s230_s10 }
  0x11   : > { %s217_s20 = scalar_lea.sflag (!%p140_p9), [#allocation3], %s159_s6 }
  0x13   : > { %s163_s24 = scalar_select %p162_p10, %s450_s16, 1  ;;  %v407_v2 = vmov 0   ;;  %v198_v28 = vld [vmem:[%s523_s1] sm:$0xff] }
  0x14   : > { %339 = vset.pattern.permute.xlu1 %v407_v2  ;;  %340 = vset.pattern.permute.xlu0 %v407_v2  ;;  %v199_v31 = vld [vmem:[%s524_s2] sm:$0xff] }
  0x15   : > { %s294_s25 = sshll.u32 %s163_s24, 3  ;;  %s345_s24 = scalar_lea.vmem %s231_s10, 128 }
  0x16   : > { %s165_s28 = scalar_lea.vmem %s522_s0, %s294_s25  ;;  %p346_p11 = scmp.ne.s32.totalorder %s231_s10, %s345_s24 }
  0x17   : > { %v166_v0 = vld [vmem:[%s165_s28] sm:$0xff]  ;;  %s408_s25 = smov [#allocation2]  }
  0x18   : > { %167 = vadd.xlane.f32.xlu0 %v166_v0  ;;  %v175_v1 = vmul.f32 %v166_v0, %v166_v0  ;;  %p347_p12 = pnand %p346_p11, %p467_p5  ;;  %s349_s26 = sshll.u32 %s408_s25, 4  ;;  %s350_s26 = int_to_ptr.vmem [resolvable:$false] %s349_s26 }
  0x19   : > { %s351_s16 = scalar_lea.vmem %s350_s26, 256  ;;  %p352_p0 = scmp.lt.s32.totalorder %s231_s10, %s350_s26 }
  0x1a   : > { %p348_p13 = pneg %p347_p12  ;;  %p353_p1 = scmp.lt.s32.totalorder %s351_s16, %s345_s24 }
  0x1c   : > { %176 = vadd.xlane.f32.xlu0 %v175_v1  ;;  %p354_p2 = por %p353_p1, %p352_p0 }
  0x1e   : > { %p355_p3 = pnand %p354_p2, %p348_p13 }
  0xa1   : > { %v168_v3 = vpop.xlane.xlu0 %167 }
  0xa2   : > { %v169_v4 = vrot.slane %v168_v3, 4 }
  0xa4   : > { %v170_v5 = vadd.f32 %v169_v4, %v168_v3 }
  0xa5   : > { %v177_v6 = vpop.xlane.xlu0 %176 }
  0xa6   : > { %v171_v7 = vrot.slane %v170_v5, 2  ;;  %v178_v8 = vrot.slane %v177_v6, 4 }
  0xa8   : > { %v172_v9 = vadd.f32 %v171_v7, %v170_v5  ;;  %v179_v10 = vadd.f32 %v178_v8, %v177_v6 }
  0xaa   : > { %v173_v11 = vrot.slane %v172_v9, 1  ;;  %v180_v12 = vrot.slane %v179_v10, 2 }
  0xac   : > { %v174_v13 = vadd.f32 %v173_v11, %v172_v9  ;;  %v181_v14 = vadd.f32 %v180_v12, %v179_v10 }
  0xae   : > { %v182_v15 = vrot.slane %v181_v14, 1  ;;  %v184_v16 = vmul.f32 0.0009765625, %v174_v13 }
  0xb0   : > { %v183_v17 = vadd.f32 %v182_v15, %v181_v14  ;;  %v185_v18 = vmul.f32 %v184_v16, %v174_v13 }
  0xb2   : > { %v186_v19 = vsub.f32 %v183_v17, %v185_v18 }
  0xb4   : > { %v187_v20 = vmul.f32 0.0009775171, %v186_v19 }
  0xb6   : > { %v188_v21 = vmax.f32 %v187_v20, 0.0 }
  0xb8   : > { %341 = vrsqrt.f32 %v188_v21  ;;  %vm191_vm0 = vcmp.eq.f32.partialorder %v188_v21, inf  ;;  %v194_v24 = vand.u32 2147483648, %v188_v21  ;;  %vm193_vm1 = vcmp.eq.f32.partialorder %v188_v21, 0.0 }
  0xc5   : > { %v342_v22 = vpop.eup %341 }
  0xc6   : > { %v190_v23 = vmul.f32 %v342_v22, %v188_v21 }
  0xc8   : > { %v192_v25 = vsel %vm191_vm0, %v188_v21, %v190_v23 }
  0xc9   : > { %v195_v26 = vsel %vm193_vm1, %v194_v24, %v192_v25 }
  0xca   : > { %v196_v27 = vadd.f32 1e-05, %v195_v26 }
  0xcc   : > { %343 = vrcp.f32 %v196_v27 }
  0xd9   : > { %v344_v29 = vpop.eup %343 }
  0xda   : > { %v200_v30 = vmul.f32 %v344_v29, %v198_v28 }
  0xdc   : > { %205 = vperm.xlu1 %339, %v200_v30   ;;  %v201_v32 = vmul.f32 %v200_v30, %v184_v16 }
  0xde   : > { %v202_v33 = vsub.f32 %v199_v31, %v201_v32 }
  0xe0   : > { %211 = vperm.xlu1 %339, %v202_v33  }
 0x157   : > { %v206_v34 = vpop.permute.xlu1 %205 }
 0x158   : > { %v208_v35 = vmul.f32 %v206_v34, %v166_v0 }
 0x15b   : > { %v212_v36 = vpop.permute.xlu1 %211 }
 0x15c   : > { %v214_v37 = vadd.f32 %v212_v36, %v208_v35 }
 0x15e   : > { %215 = vst [vmem:[%s161_s9] sm:$0xff] %v214_v37 }
 0x15f   : > { %358 = shalt.err (!%p355_p3)
}
 0x160   : > { %s359_s27 = scalar_lea.hbm %s228_s19, 128  ;;  %s363_s30 = scalar_lea.hbm %s525_s3, 256 }
 0x161   : > { %p360_p4 = scmp.ne.s32.totalorder %s228_s19, %s359_s27  ;;  %p364_p9 = scmp.lt.s32.totalorder %s228_s19, %s525_s3 }
 0x162   : > { %p365_p10 = scmp.lt.s32.totalorder %s363_s30, %s359_s27 }
 0x163   : > { %p361_p7 = pnand %p360_p4, %p467_p5 }
 0x164   : > { %p366_p11 = por %p365_p10, %p364_p9 }
 0x165   : > { %p362_p8 = pneg %p361_p7 }
 0x167   : > { %p367_p12 = pnand %p366_p11, %p362_p8 }
 0x169   : > { %370 = shalt.err (!%p367_p12)
}
 0x16a   : > { %299 = dma.vmem_to_hbm [thread:$0]  (%p467_p5), %s231_s10, 128, %s228_s19, %s217_s20  }
 0x16b PF: > { %p305_p13 = scmp.ge.s32.totalorder %s405_s15, 2  ;;  %s242_s6 = sand.u32 1, %s393_s12  }
 0x16c   : > { %s243_s7 = scalar_lea.sflag [#allocation3], %s242_s6 }
 0x16d   : > { %p302_p0 = pnand %p305_p13, %p471_p6 }
 0x16f   : > { %p303_p1 = pneg %p302_p0 }
 0x171   : > { %388 = dma.done.wait (%p303_p1), %s243_s7, 128  }
 0x172   : > { %390 = vsyncadd (%p303_p1), %s243_s7, 4294967168  ;;  %p13_p2 = scmp.ge.s32.totalorder %s454_s18, 4   ;;  %s528_s12 = smov %s397_s13 }
 0x173   : > { %s529_s13 = smov %s401_s14  ;;  %s530_s14 = smov %s465_s21 }
 0x174   : > { %s531_s15 = smov %s454_s18  ;;  %15 = sbr.rel (!%p13_p2) target bundleno = 3 (0x3), region = 67 }
 0x179   :  { %248 = vsyncpa [#allocation3], 1 }
 0x17a   :  { %250 = vsyncpa [#allocation3 + $0x1], 1 }

</bundles_post_ra>
